<compile_context>
chip_gen: v7x
topology: tpu7x:2x2x1
jax: 0.10.0
libtpu: 0.0.40
codegen_flags: <defaults>
</compile_context>

<pallas_src>
import functools

import jax
import jax.numpy as jnp
from jax import lax
from jax.experimental import pallas as pl
from jax.experimental.pallas import tpu as pltpu


def _silu(x):
    # x * sigmoid(x); sigmoid (lax.logistic) keeps the transcendental on EUP.
    return x * jax.nn.sigmoid(x)


def resunit_kernel(x_ref, w1_ref, b1_ref, w2_ref, b2_ref, nl_ref, nf_ref,
                   o_ref, *, width):
    # x_ref : (bn, C, HW) f32        w1_ref: (C2, C)    bf16 (BN scale folded)
    # b1_ref: (C2, 1) f32            w2_ref: (C, 9*C2)  bf16 (BN scale folded)
    # b2_ref: (C, 1) f32             nl/nf : (1, HW)    f32 boundary masks
    # o_ref : (bn, C, HW) f32
    bn, C, HW = x_ref.shape
    C2 = w1_ref.shape[0]
    W = width
    PAD = W + 1                                     # covers the 3x3 halo

    w1 = w1_ref[...]                                # (C2, C) bf16
    w2 = w2_ref[...]                                # (C, 9*C2) bf16
    b1 = b1_ref[...]                                # (C2, 1) f32
    b2 = b2_ref[...]                                # (C, 1) f32
    not_last = nl_ref[...] != 0.0                   # input col != W-1
    not_first = nf_ref[...] != 0.0                  # input col != 0
    zpad = jnp.zeros((C2, PAD), jnp.bfloat16)

    # Static loop over images in this block: 1 on per-image grid (v7x),
    # N on the collapsed single-invocation grid (v5e/v6e).
    for n in range(bn):
        x = x_ref[n]                                # (C, HW) f32, lane-dense

        # ---- CBLconv #1: 1x1 conv == channel matmul (bf16 MXU, f32 acc) ----
        y1 = jnp.dot(w1, x.astype(jnp.bfloat16),
                     preferred_element_type=jnp.float32)        # (C2, HW)
        y1 = _silu(y1 + b1)                                     # f32

        # ---- CBLconv #2: 3x3 "same" conv as one im2col matmul (K = 9*C2) ---
        # Three zero-padded halo buffers: center (dx==1 taps) plus two
        # pre-masked copies that zero the input column that would otherwise
        # wrap across image rows for the dx==0 / dx==2 taps.
        y1_c = y1.astype(jnp.bfloat16)
        y1_l = jnp.where(not_last, y1, 0.0).astype(jnp.bfloat16)
        y1_r = jnp.where(not_first, y1, 0.0).astype(jnp.bfloat16)
        buf = (
            jnp.concatenate([zpad, y1_l, zpad], axis=1),   # dx == 0 taps
            jnp.concatenate([zpad, y1_c, zpad], axis=1),   # dx == 1 taps
            jnp.concatenate([zpad, y1_r, zpad], axis=1),   # dx == 2 taps
        )                                                  # (C2, HW + 2*PAD)

        taps = []
        for dy in range(3):                          # static, trace-time
            for dx in range(3):
                start = PAD + (dy - 1) * W + (dx - 1)
                taps.append(buf[dx][:, start:start + HW])   # lane-shifted slice
        patches = jnp.concatenate(taps, axis=0)             # (9*C2, HW) bf16

        y2 = jnp.dot(w2, patches,
                     preferred_element_type=jnp.float32)     # (C, HW)
        y2 = _silu(y2 + b2)

        # ---- residual add, lane-dense store ----
        o_ref[n] = x + y2


def _multi_tensorcore_chip():
    """True on chips exposing >1 TensorCore per JAX device (v7x, v4/v5p)."""
    try:
        kind = jax.devices()[0].device_kind.lower()
    except Exception:
        return True
    return any(tag in kind for tag in ("v7", "v4", "v5p"))


def resunit_pallas(x_flat, w1, b1, w2, b2, *, width, per_image_grid=None):
    # x_flat: (N, C, H*W) f32 (== NCHW with spatial flattened)
    # w1: (C2, C) bf16, BN scale folded      b1: (C2, 1) f32
    # w2: (C, 9*C2) bf16, BN scale folded    b2: (C, 1) f32
    N, C, HW = x_flat.shape
    C2 = w1.shape[0]
    if per_image_grid is None:
        per_image_grid = _multi_tensorcore_chip()
    bn = 1 if per_image_grid else N                  # images per grid step
    grid = (N // bn,)

    # Horizontal boundary masks, built ONCE on the host side (hoisted out of
    # the per-step body): input-column identity along the flattened HW axis.
    col = (jnp.arange(HW, dtype=jnp.int32) % width)[None, :]
    not_last = (col != width - 1).astype(jnp.float32)    # (1, HW)
    not_first = (col != 0).astype(jnp.float32)           # (1, HW)

    kernel = functools.partial(resunit_kernel, width=width)
    return pl.pallas_call(
        kernel,
        out_shape=jax.ShapeDtypeStruct((N, C, HW), jnp.float32),
        grid_spec=pltpu.PrefetchScalarGridSpec(
            num_scalar_prefetch=0,
            grid=grid,
            in_specs=[
                pl.BlockSpec((bn, C, HW), lambda n: (n, 0, 0)),
                pl.BlockSpec((C2, C), lambda n: (0, 0)),
                pl.BlockSpec((C2, 1), lambda n: (0, 0)),
                pl.BlockSpec((C, 9 * C2), lambda n: (0, 0)),
                pl.BlockSpec((C, 1), lambda n: (0, 0)),
                pl.BlockSpec((1, HW), lambda n: (0, 0)),
                pl.BlockSpec((1, HW), lambda n: (0, 0)),
            ],
            out_specs=pl.BlockSpec((bn, C, HW), lambda n: (n, 0, 0)),
        ),
        compiler_params=pltpu.CompilerParams(
            dimension_semantics=("parallel",)),
    )(x_flat, w1, b1, w2, b2, not_last, not_first)


def reference_nchw(x, w1_oihw, s1, b1, w2_oihw, s2, b2):
    dn = ("NCHW", "OIHW", "NCHW")
    y = lax.conv_general_dilated(x, w1_oihw, (1, 1), "SAME", dimension_numbers=dn)
    y = y * s1[None, :, None, None] + b1[None, :, None, None]
    y = _silu(y)
    y = lax.conv_general_dilated(y, w2_oihw, (1, 1), "SAME", dimension_numbers=dn)
    y = y * s2[None, :, None, None] + b2[None, :, None, None]
    y = _silu(y)
    return x + y


if __name__ == "__main__":
    # Small shapes consistent with ResUnit(in_channels=32): N=2, C=32, H=W=16.
    N, C, H, W = 2, 32, 16, 16
    C2 = C // 2
    eps = 1e-5

    key = jax.random.PRNGKey(0)
    keys = jax.random.split(key, 12)

    x_nchw = jax.random.normal(keys[0], (N, C, H, W), jnp.float32)

    # Conv weights in PyTorch OIHW layout (bias=False).
    w1_oihw = jax.random.normal(keys[1], (C2, C, 1, 1), jnp.float32) * 0.1
    w2_oihw = jax.random.normal(keys[2], (C, C2, 3, 3), jnp.float32) * 0.1

    # BatchNorm parameters, folded into per-channel scale/bias (eval mode).
    g1 = jax.random.normal(keys[3], (C2,), jnp.float32) * 0.1 + 1.0
    be1 = jax.random.normal(keys[4], (C2,), jnp.float32) * 0.1
    rm1 = jax.random.normal(keys[5], (C2,), jnp.float32) * 0.1
    rv1 = jax.random.uniform(keys[6], (C2,), jnp.float32, 0.5, 1.5)
    g2 = jax.random.normal(keys[7], (C,), jnp.float32) * 0.1 + 1.0
    be2 = jax.random.normal(keys[8], (C,), jnp.float32) * 0.1
    rm2 = jax.random.normal(keys[9], (C,), jnp.float32) * 0.1
    rv2 = jax.random.uniform(keys[10], (C,), jnp.float32, 0.5, 1.5)

    s1 = g1 / jnp.sqrt(rv1 + eps)
    b1 = be1 - rm1 * s1
    s2 = g2 / jnp.sqrt(rv2 + eps)
    b2 = be2 - rm2 * s2

    # Kernel-layout weights: BN scale folded into the conv weights, bf16 cast
    # for the MXU (accumulation stays f32 inside the kernel).
    w1_k = (w1_oihw[:, :, 0, 0] * s1[:, None]).astype(jnp.bfloat16)     # (C2, C)
    w2_k = (jnp.transpose(w2_oihw, (0, 2, 3, 1)).reshape(C, 9 * C2)
            * s2[:, None]).astype(jnp.bfloat16)                          # (C, 9*C2)

    x_flat = x_nchw.reshape(N, C, H * W)
    out_flat = resunit_pallas(
        x_flat, w1_k, b1[:, None], w2_k, b2[:, None], width=W)
    out_flat = jax.block_until_ready(out_flat)
    out_nchw = out_flat.reshape(N, C, H, W)

    ref = reference_nchw(x_nchw, w1_oihw, s1, b1, w2_oihw, s2, b2)
    # Tolerance loosened for bf16 MXU operands (f32 accumulation).
    max_err = float(jnp.max(jnp.abs(out_nchw - ref)))
    assert jnp.allclose(out_nchw, ref, atol=5e-2, rtol=2e-2), max_err

    print("KERNEL_OK")
</pallas_src>

<mosaic_0001>
module attributes {stable_mosaic.version = 11 : i64} {
  func.func @resunit_kernel(%arg0: i32, %arg1: memref<2x32x256xf32, #tpu.memory_space<vmem>>, %arg2: memref<16x32xbf16, #tpu.memory_space<vmem>>, %arg3: memref<16x1xf32, #tpu.memory_space<vmem>>, %arg4: memref<32x144xbf16, #tpu.memory_space<vmem>>, %arg5: memref<32x1xf32, #tpu.memory_space<vmem>>, %arg6: memref<1x256xf32, #tpu.memory_space<vmem>>, %arg7: memref<1x256xf32, #tpu.memory_space<vmem>>, %arg8: memref<2x32x256xf32, #tpu.memory_space<vmem>>) attributes {dimension_semantics = [#tpu.dimension_semantics<parallel>], iteration_bounds = array<i64: 1>, scalar_prefetch = 0 : i64, scratch_operands = 0 : i64, tpu.core_type = #tpu.core_type<tc>, window_params = [{transform_indices = @transform_0, window_bounds = array<i64: 2, 32, 256>}, {pipeline_mode = #tpu.pipeline_mode<synchronous>, transform_indices = @transform_1, window_bounds = array<i64: 16, 32>}, {pipeline_mode = #tpu.pipeline_mode<synchronous>, transform_indices = @transform_2, window_bounds = array<i64: 16, 1>}, {pipeline_mode = #tpu.pipeline_mode<synchronous>, transform_indices = @transform_3, window_bounds = array<i64: 32, 144>}, {pipeline_mode = #tpu.pipeline_mode<synchronous>, transform_indices = @transform_4, window_bounds = array<i64: 32, 1>}, {pipeline_mode = #tpu.pipeline_mode<synchronous>, transform_indices = @transform_5, window_bounds = array<i64: 1, 256>}, {pipeline_mode = #tpu.pipeline_mode<synchronous>, transform_indices = @transform_6, window_bounds = array<i64: 1, 256>}, {transform_indices = @transform_7, window_bounds = array<i64: 2, 32, 256>}]} {
    %c0 = arith.constant 0 : index
    %c0_0 = arith.constant 0 : index
    %0 = vector.load %arg2[%c0, %c0_0] : memref<16x32xbf16, #tpu.memory_space<vmem>>, vector<16x32xbf16>
    %c0_1 = arith.constant 0 : index
    %c0_2 = arith.constant 0 : index
    %1 = vector.load %arg4[%c0_1, %c0_2] : memref<32x144xbf16, #tpu.memory_space<vmem>>, vector<32x144xbf16>
    %c0_3 = arith.constant 0 : index
    %c0_4 = arith.constant 0 : index
    %2 = vector.load %arg3[%c0_3, %c0_4] : memref<16x1xf32, #tpu.memory_space<vmem>>, vector<16x1xf32>
    %c0_5 = arith.constant 0 : index
    %c0_6 = arith.constant 0 : index
    %3 = vector.load %arg5[%c0_5, %c0_6] : memref<32x1xf32, #tpu.memory_space<vmem>>, vector<32x1xf32>
    %c0_7 = arith.constant 0 : index
    %c0_8 = arith.constant 0 : index
    %4 = vector.load %arg6[%c0_7, %c0_8] : memref<1x256xf32, #tpu.memory_space<vmem>>, vector<1x256xf32>
    %cst = arith.constant 0.000000e+00 : f32
    %5 = vector.broadcast %cst : f32 to vector<1x256xf32>
    %6 = arith.cmpf one, %4, %5 : vector<1x256xf32>
    %c0_9 = arith.constant 0 : index
    %c0_10 = arith.constant 0 : index
    %7 = vector.load %arg7[%c0_9, %c0_10] : memref<1x256xf32, #tpu.memory_space<vmem>>, vector<1x256xf32>
    %cst_11 = arith.constant 0.000000e+00 : f32
    %8 = vector.broadcast %cst_11 : f32 to vector<1x256xf32>
    %9 = arith.cmpf one, %7, %8 : vector<1x256xf32>
    %cst_12 = arith.constant 0.000000e+00 : bf16
    %10 = vector.broadcast %cst_12 : bf16 to vector<16x17xbf16>
    %c0_13 = arith.constant 0 : index
    %c0_14 = arith.constant 0 : index
    %c0_15 = arith.constant 0 : index
    %11 = vector.load %arg1[%c0_13, %c0_14, %c0_15] : memref<2x32x256xf32, #tpu.memory_space<vmem>>, vector<1x32x256xf32>
    %12 = vector.shape_cast %11 : vector<1x32x256xf32> to vector<32x256xf32>
    %13 = arith.truncf %12 : vector<32x256xf32> to vector<32x256xbf16>
    %cst_16 = arith.constant dense<0.000000e+00> : vector<16x256xf32>
    %14 = tpu.matmul %0, %13, %cst_16 {dimension_numbers = #tpu.dot_dimension_numbers<[1], [0], [0], [1], [0, 0, 1, 1], [], []>} : vector<16x32xbf16>, vector<32x256xbf16>, vector<16x256xf32> -> vector<16x256xf32>
    %15 = vector.broadcast %2 : vector<16x1xf32> to vector<16x256xf32>
    %16 = arith.addf %14, %15 : vector<16x256xf32>
    %17 = arith.negf %16 : vector<16x256xf32>
    %18 = math.exp %17 : vector<16x256xf32>
    %cst_17 = arith.constant 1.000000e+00 : f32
    %19 = vector.broadcast %cst_17 : f32 to vector<16x256xf32>
    %20 = arith.addf %19, %18 : vector<16x256xf32>
    %21 = arith.divf %19, %20 : vector<16x256xf32>
    %22 = arith.mulf %16, %21 : vector<16x256xf32>
    %23 = arith.truncf %22 : vector<16x256xf32> to vector<16x256xbf16>
    %cst_18 = arith.constant 0.000000e+00 : f32
    %24 = vector.shape_cast %6 : vector<1x256xi1> to vector<1x256xi1>
    %25 = vector.broadcast %24 : vector<1x256xi1> to vector<16x256xi1>
    %26 = vector.broadcast %cst_18 : f32 to vector<16x256xf32>
    %27 = arith.select %25, %22, %26 : vector<16x256xi1>, vector<16x256xf32>
    %28 = arith.truncf %27 : vector<16x256xf32> to vector<16x256xbf16>
    %cst_19 = arith.constant 0.000000e+00 : f32
    %29 = vector.shape_cast %9 : vector<1x256xi1> to vector<1x256xi1>
    %30 = vector.broadcast %29 : vector<1x256xi1> to vector<16x256xi1>
    %31 = vector.broadcast %cst_19 : f32 to vector<16x256xf32>
    %32 = arith.select %30, %22, %31 : vector<16x256xi1>, vector<16x256xf32>
    %33 = arith.truncf %32 : vector<16x256xf32> to vector<16x256xbf16>
    %34 = tpu.concatenate %10, %28, %10 in 1 : vector<16x17xbf16>, vector<16x256xbf16>, vector<16x17xbf16> -> vector<16x290xbf16>
    %35 = tpu.concatenate %10, %23, %10 in 1 : vector<16x17xbf16>, vector<16x256xbf16>, vector<16x17xbf16> -> vector<16x290xbf16>
    %36 = tpu.concatenate %10, %33, %10 in 1 : vector<16x17xbf16>, vector<16x256xbf16>, vector<16x17xbf16> -> vector<16x290xbf16>
    %37 = vector.extract_strided_slice %34 {offsets = [0, 0], sizes = [16, 256], strides = [1, 1]} : vector<16x290xbf16> to vector<16x256xbf16>
    %38 = vector.extract_strided_slice %35 {offsets = [0, 1], sizes = [16, 256], strides = [1, 1]} : vector<16x290xbf16> to vector<16x256xbf16>
    %39 = vector.extract_strided_slice %36 {offsets = [0, 2], sizes = [16, 256], strides = [1, 1]} : vector<16x290xbf16> to vector<16x256xbf16>
    %40 = vector.extract_strided_slice %34 {offsets = [0, 16], sizes = [16, 256], strides = [1, 1]} : vector<16x290xbf16> to vector<16x256xbf16>
    %41 = vector.extract_strided_slice %35 {offsets = [0, 17], sizes = [16, 256], strides = [1, 1]} : vector<16x290xbf16> to vector<16x256xbf16>
    %42 = vector.extract_strided_slice %36 {offsets = [0, 18], sizes = [16, 256], strides = [1, 1]} : vector<16x290xbf16> to vector<16x256xbf16>
    %43 = vector.extract_strided_slice %34 {offsets = [0, 32], sizes = [16, 256], strides = [1, 1]} : vector<16x290xbf16> to vector<16x256xbf16>
    %44 = vector.extract_strided_slice %35 {offsets = [0, 33], sizes = [16, 256], strides = [1, 1]} : vector<16x290xbf16> to vector<16x256xbf16>
    %45 = vector.extract_strided_slice %36 {offsets = [0, 34], sizes = [16, 256], strides = [1, 1]} : vector<16x290xbf16> to vector<16x256xbf16>
    %46 = tpu.concatenate %37, %38, %39, %40, %41, %42, %43, %44, %45 in 0 : vector<16x256xbf16>, vector<16x256xbf16>, vector<16x256xbf16>, vector<16x256xbf16>, vector<16x256xbf16>, vector<16x256xbf16>, vector<16x256xbf16>, vector<16x256xbf16>, vector<16x256xbf16> -> vector<144x256xbf16>
    %cst_20 = arith.constant dense<0.000000e+00> : vector<32x256xf32>
    %47 = tpu.matmul %1, %46, %cst_20 {dimension_numbers = #tpu.dot_dimension_numbers<[1], [0], [0], [1], [0, 0, 1, 1], [], []>} : vector<32x144xbf16>, vector<144x256xbf16>, vector<32x256xf32> -> vector<32x256xf32>
    %48 = vector.broadcast %3 : vector<32x1xf32> to vector<32x256xf32>
    %49 = arith.addf %47, %48 : vector<32x256xf32>
    %50 = arith.negf %49 : vector<32x256xf32>
    %51 = math.exp %50 : vector<32x256xf32>
    %cst_21 = arith.constant 1.000000e+00 : f32
    %52 = vector.broadcast %cst_21 : f32 to vector<32x256xf32>
    %53 = arith.addf %52, %51 : vector<32x256xf32>
    %54 = arith.divf %52, %53 : vector<32x256xf32>
    %55 = arith.mulf %49, %54 : vector<32x256xf32>
    %56 = arith.addf %12, %55 : vector<32x256xf32>
    %c0_22 = arith.constant 0 : index
    %c0_23 = arith.constant 0 : index
    %c0_24 = arith.constant 0 : index
    %57 = vector.load %arg8[%c0_22, %c0_23, %c0_24] : memref<2x32x256xf32, #tpu.memory_space<vmem>>, vector<1x32x256xf32>
    %58 = vector.shape_cast %57 : vector<1x32x256xf32> to vector<32x256xf32>
    %59 = vector.shape_cast %56 : vector<32x256xf32> to vector<1x32x256xf32>
    tpu.vector_store %arg8[%c0_22, %c0_23, %c0_24], %59 {strides = array<i32>} : memref<2x32x256xf32, #tpu.memory_space<vmem>>, vector<1x32x256xf32>,
    %c1 = arith.constant 1 : index
    %c0_25 = arith.constant 0 : index
    %c0_26 = arith.constant 0 : index
    %60 = vector.load %arg1[%c1, %c0_25, %c0_26] : memref<2x32x256xf32, #tpu.memory_space<vmem>>, vector<1x32x256xf32>
    %61 = vector.shape_cast %60 : vector<1x32x256xf32> to vector<32x256xf32>
    %62 = arith.truncf %61 : vector<32x256xf32> to vector<32x256xbf16>
    %cst_27 = arith.constant dense<0.000000e+00> : vector<16x256xf32>
    %63 = tpu.matmul %0, %62, %cst_27 {dimension_numbers = #tpu.dot_dimension_numbers<[1], [0], [0], [1], [0, 0, 1, 1], [], []>} : vector<16x32xbf16>, vector<32x256xbf16>, vector<16x256xf32> -> vector<16x256xf32>
    %64 = vector.broadcast %2 : vector<16x1xf32> to vector<16x256xf32>
    %65 = arith.addf %63, %64 : vector<16x256xf32>
    %66 = arith.negf %65 : vector<16x256xf32>
    %67 = math.exp %66 : vector<16x256xf32>
    %cst_28 = arith.constant 1.000000e+00 : f32
    %68 = vector.broadcast %cst_28 : f32 to vector<16x256xf32>
    %69 = arith.addf %68, %67 : vector<16x256xf32>
    %70 = arith.divf %68, %69 : vector<16x256xf32>
    %71 = arith.mulf %65, %70 : vector<16x256xf32>
    %72 = arith.truncf %71 : vector<16x256xf32> to vector<16x256xbf16>
    %cst_29 = arith.constant 0.000000e+00 : f32
    %73 = vector.shape_cast %6 : vector<1x256xi1> to vector<1x256xi1>
    %74 = vector.broadcast %73 : vector<1x256xi1> to vector<16x256xi1>
    %75 = vector.broadcast %cst_29 : f32 to vector<16x256xf32>
    %76 = arith.select %74, %71, %75 : vector<16x256xi1>, vector<16x256xf32>
    %77 = arith.truncf %76 : vector<16x256xf32> to vector<16x256xbf16>
    %cst_30 = arith.constant 0.000000e+00 : f32
    %78 = vector.shape_cast %9 : vector<1x256xi1> to vector<1x256xi1>
    %79 = vector.broadcast %78 : vector<1x256xi1> to vector<16x256xi1>
    %80 = vector.broadcast %cst_30 : f32 to vector<16x256xf32>
    %81 = arith.select %79, %71, %80 : vector<16x256xi1>, vector<16x256xf32>
    %82 = arith.truncf %81 : vector<16x256xf32> to vector<16x256xbf16>
    %83 = tpu.concatenate %10, %77, %10 in 1 : vector<16x17xbf16>, vector<16x256xbf16>, vector<16x17xbf16> -> vector<16x290xbf16>
    %84 = tpu.concatenate %10, %72, %10 in 1 : vector<16x17xbf16>, vector<16x256xbf16>, vector<16x17xbf16> -> vector<16x290xbf16>
    %85 = tpu.concatenate %10, %82, %10 in 1 : vector<16x17xbf16>, vector<16x256xbf16>, vector<16x17xbf16> -> vector<16x290xbf16>
    %86 = vector.extract_strided_slice %83 {offsets = [0, 0], sizes = [16, 256], strides = [1, 1]} : vector<16x290xbf16> to vector<16x256xbf16>
    %87 = vector.extract_strided_slice %84 {offsets = [0, 1], sizes = [16, 256], strides = [1, 1]} : vector<16x290xbf16> to vector<16x256xbf16>
    %88 = vector.extract_strided_slice %85 {offsets = [0, 2], sizes = [16, 256], strides = [1, 1]} : vector<16x290xbf16> to vector<16x256xbf16>
    %89 = vector.extract_strided_slice %83 {offsets = [0, 16], sizes = [16, 256], strides = [1, 1]} : vector<16x290xbf16> to vector<16x256xbf16>
    %90 = vector.extract_strided_slice %84 {offsets = [0, 17], sizes = [16, 256], strides = [1, 1]} : vector<16x290xbf16> to vector<16x256xbf16>
    %91 = vector.extract_strided_slice %85 {offsets = [0, 18], sizes = [16, 256], strides = [1, 1]} : vector<16x290xbf16> to vector<16x256xbf16>
    %92 = vector.extract_strided_slice %83 {offsets = [0, 32], sizes = [16, 256], strides = [1, 1]} : vector<16x290xbf16> to vector<16x256xbf16>
    %93 = vector.extract_strided_slice %84 {offsets = [0, 33], sizes = [16, 256], strides = [1, 1]} : vector<16x290xbf16> to vector<16x256xbf16>
    %94 = vector.extract_strided_slice %85 {offsets = [0, 34], sizes = [16, 256], strides = [1, 1]} : vector<16x290xbf16> to vector<16x256xbf16>
    %95 = tpu.concatenate %86, %87, %88, %89, %90, %91, %92, %93, %94 in 0 : vector<16x256xbf16>, vector<16x256xbf16>, vector<16x256xbf16>, vector<16x256xbf16>, vector<16x256xbf16>, vector<16x256xbf16>, vector<16x256xbf16>, vector<16x256xbf16>, vector<16x256xbf16> -> vector<144x256xbf16>
    %cst_31 = arith.constant dense<0.000000e+00> : vector<32x256xf32>
    %96 = tpu.matmul %1, %95, %cst_31 {dimension_numbers = #tpu.dot_dimension_numbers<[1], [0], [0], [1], [0, 0, 1, 1], [], []>} : vector<32x144xbf16>, vector<144x256xbf16>, vector<32x256xf32> -> vector<32x256xf32>
    %97 = vector.broadcast %3 : vector<32x1xf32> to vector<32x256xf32>
    %98 = arith.addf %96, %97 : vector<32x256xf32>
    %99 = arith.negf %98 : vector<32x256xf32>
    %100 = math.exp %99 : vector<32x256xf32>
    %cst_32 = arith.constant 1.000000e+00 : f32
    %101 = vector.broadcast %cst_32 : f32 to vector<32x256xf32>
    %102 = arith.addf %101, %100 : vector<32x256xf32>
    %103 = arith.divf %101, %102 : vector<32x256xf32>
    %104 = arith.mulf %98, %103 : vector<32x256xf32>
    %105 = arith.addf %61, %104 : vector<32x256xf32>
    %c1_33 = arith.constant 1 : index
    %c0_34 = arith.constant 0 : index
    %c0_35 = arith.constant 0 : index
    %106 = vector.load %arg8[%c1_33, %c0_34, %c0_35] : memref<2x32x256xf32, #tpu.memory_space<vmem>>, vector<1x32x256xf32>
    %107 = vector.shape_cast %106 : vector<1x32x256xf32> to vector<32x256xf32>
    %108 = vector.shape_cast %105 : vector<32x256xf32> to vector<1x32x256xf32>
    tpu.vector_store %arg8[%c1_33, %c0_34, %c0_35], %108 {strides = array<i32>} : memref<2x32x256xf32, #tpu.memory_space<vmem>>, vector<1x32x256xf32>,
    return
  }
  func.func @transform_0(%arg0: i32) -> (i32, i32, i32) {
    %c0_i32 = arith.constant 0 : i32
    %c0_i32_0 = arith.constant 0 : i32
    %c0_i32_1 = arith.constant 0 : i32
    return %arg0, %c0_i32, %c0_i32_0 : i32, i32, i32
  }
  func.func @transform_1(%arg0: i32) -> (i32, i32) {
    %c0_i32 = arith.constant 0 : i32
    %c0_i32_0 = arith.constant 0 : i32
    %c0_i32_1 = arith.constant 0 : i32
    return %c0_i32, %c0_i32_0 : i32, i32
  }
  func.func @transform_2(%arg0: i32) -> (i32, i32) {
    %c0_i32 = arith.constant 0 : i32
    %c0_i32_0 = arith.constant 0 : i32
    %c0_i32_1 = arith.constant 0 : i32
    return %c0_i32, %c0_i32_0 : i32, i32
  }
  func.func @transform_3(%arg0: i32) -> (i32, i32) {
    %c0_i32 = arith.constant 0 : i32
    %c0_i32_0 = arith.constant 0 : i32
    %c0_i32_1 = arith.constant 0 : i32
    return %c0_i32, %c0_i32_0 : i32, i32
  }
  func.func @transform_4(%arg0: i32) -> (i32, i32) {
    %c0_i32 = arith.constant 0 : i32
    %c0_i32_0 = arith.constant 0 : i32
    %c0_i32_1 = arith.constant 0 : i32
    return %c0_i32, %c0_i32_0 : i32, i32
  }
  func.func @transform_5(%arg0: i32) -> (i32, i32) {
    %c0_i32 = arith.constant 0 : i32
    %c0_i32_0 = arith.constant 0 : i32
    %c0_i32_1 = arith.constant 0 : i32
    return %c0_i32, %c0_i32_0 : i32, i32
  }
  func.func @transform_6(%arg0: i32) -> (i32, i32) {
    %c0_i32 = arith.constant 0 : i32
    %c0_i32_0 = arith.constant 0 : i32
    %c0_i32_1 = arith.constant 0 : i32
    return %c0_i32, %c0_i32_0 : i32, i32
  }
  func.func @transform_7(%arg0: i32) -> (i32, i32, i32) {
    %c0_i32 = arith.constant 0 : i32
    %c0_i32_0 = arith.constant 0 : i32
    %c0_i32_1 = arith.constant 0 : i32
    return %arg0, %c0_i32, %c0_i32_0 : i32, i32, i32
  }
}

</mosaic_0001>

<bundles_post_ra>
// kernel: tpu_custom_call.1
= control target key start
LH: loop header
LB: loop body
LE: loop exit
PB: predicated region body
PF: predicated region fallthrough
CT: control target
= control target key end

     0   :  { %12 = vsyncpa [#allocation3], 0  ;;  %s1417_s0 = inlined_call_operand.hbm [shape: f32[2,32,256], index: 0, kind: input, shape index: {}]   ;;  %s1418_s1 = inlined_call_operand.vmem [shape: bf16[16,32], index: 1, kind: input, shape index: {}]   ;;  %s1419_s2 = inlined_call_operand.vmem [shape: f32[16,1], index: 2, kind: input, shape index: {}]   ;;  %s1420_s3 = inlined_call_operand.vmem [shape: bf16[32,144], index: 3, kind: input, shape index: {}]   ;;  %s1421_s4 = inlined_call_operand.vmem [shape: f32[32,1], index: 4, kind: input, shape index: {}]   ;;  %s1422_s5 = inlined_call_operand.vmem [shape: f32[1,256], index: 5, kind: input, shape index: {}]   ;;  %s1423_s6 = inlined_call_operand.vmem [shape: f32[1,256], index: 6, kind: input, shape index: {}]   ;;  %s1424_s7 = inlined_call_operand.hbm [shape: f32[2,32,256], index: 7, kind: output, shape index: {}]  }
   0x1   :  { %13 = vsyncpa [#allocation4], 0  ;;  %s1082_s24 = smov [#allocation2]   ;;  %s1034_s28 = scalar_lea.hbm %s1417_s0, 2048 }
   0x2   :  { %s19_s25 = sshll.u32 %s1082_s24, 4  ;;  %p1035_p0 = scmp.ne.s32.totalorder %s1417_s0, %s1034_s28  ;;  %s20_s25 = int_to_ptr.vmem [resolvable:$true] %s19_s25 }
   0x3   :  { %p1038_p1 = scmp.lt.u32.totalorder %s1034_s28, %s1417_s0 }
   0x5   :  { %p1040_p2 = pnand %p1038_p1, %p1035_p0 }
   0x7   :  { %1043 = shalt.err (!%p1040_p2)
}
   0x8   :  { %s1044_s10 = scalar_lea.vmem %s20_s25, 2048  ;;  %p1049_p4 = scmp.lt.s32.totalorder %s20_s25, %s20_s25 }
   0x9   :  { %p1045_p3 = scmp.ne.s32.totalorder %s20_s25, %s1044_s10  ;;  %p1050_p5 = scmp.lt.s32.totalorder %s1044_s10, %s1044_s10 }
   0xb   :  { %p1051_p6 = por %p1050_p5, %p1049_p4 }
   0xd   :  { %p1052_p7 = pnand %p1051_p6, %p1045_p3 }
   0xf   :  { %1055 = shalt.err (!%p1052_p7)
}
  0x10   :  { %s1083_s11 = smov 256   ;;  %s1084_s12 = smov 16  }
  0x11   :  { %25 = dma.hbm_to_vmem [thread:$0]  %s1417_s0, 2048, %s20_s25, [#allocation3], %s1083_s11, %s1083_s11, %s1084_s12  }
  0x12   :  { %1078 = dma.done.wait [#allocation3], 2048  }
  0x13   :  { %1079 = vsyncadd [#allocation3], 4294965248  ;;  %v1085_v0 = vmov 0   ;;  %v59_v1 = vld [vmem:[#allocation2 + $0x8] sm:$0xff]  ;;  %v61_v2 = vld [vmem:[#allocation2 + $0x18] sm:$0xff]  ;;  %vm85_vm0 = vcmask 261120   ;;  %v163_v54 = vlaneseq }
  0x14   :  { %121 = vmatprep.mubr.bf16.mxu1 %v1085_v0  ;;  %543 = vmatprep.mubr.bf16.mxu0 %v1085_v0  ;;  %v500_v3 = vld [vmem:[#allocation2 + $0x48] sm:$0xff]  ;;  %v67_v4 = vpack.c.bf16 %v61_v2, %v59_v1  ;;  %v502_v5 = vld [vmem:[#allocation2 + $0x58] sm:$0xff]  ;;  %v58_v6 = vld [vmem:[#allocation2] sm:$0xff]  ;;  %vm202_vm7 = vcmask 138240   ;;  %s1088_s22 = smov 111   ;;  %s1089_s23 = smov 95  }
  0x15   :  { %913 = vset.pattern.permute.xlu0 %v1085_v0  ;;  %914 = vset.pattern.permute.xlu1 %v1085_v0  ;;  %v60_v7 = vld [vmem:[#allocation2 + $0x10] sm:$0xff]  ;;  %v508_v8 = vpack.c.bf16 %v502_v5, %v500_v3  ;;  %v499_v10 = vld [vmem:[#allocation2 + $0x40] sm:$0xff]  ;;  %v63_v12 = vld [vmem:[#allocation2 + $0x28] sm:$0xff]  ;;  %v164_v62 = vshrl.u32 %v163_v54, 7  ;;  %s1090_s24 = smov 126   ;;  %s1091_s25 = smov 112  }
  0x16   :  { %v66_v9 = vpack.c.bf16 %v60_v7, %v58_v6  ;;  %v501_v11 = vld [vmem:[#allocation2 + $0x50] sm:$0xff]  ;;  %89 = vmatprep.subr.bf16.mxu1 %v67_v4  ;;  %v65_v14 = vld [vmem:[#allocation2 + $0x38] sm:$0xff]  ;;  %v504_v15 = vld [vmem:[#allocation2 + $0x68] sm:$0xff]  ;;  %s1092_s26 = smov 110   ;;  %s1093_s27 = smov 96   ;;  %vm366_vm9 = vcmask 130048  }
  0x17   :  { %v507_v13 = vpack.c.bf16 %v501_v11, %v499_v10  ;;  %v506_v16 = vld [vmem:[#allocation2 + $0x78] sm:$0xff]  ;;  %511 = vmatprep.subr.bf16.mxu0 %v508_v8  ;;  %v69_v17 = vpack.c.bf16 %v65_v14, %v63_v12  ;;  %v62_v19 = vld [vmem:[#allocation2 + $0x20] sm:$0xff]  ;;  %v64_v20 = vld [vmem:[#allocation2 + $0x30] sm:$0xff]  ;;  %v165_v8 = vsub.s32 0, %v164_v62  ;;  %s1094_s30 = smov 94   ;;  %vm242_vm10 = vcmask 1039360  }
  0x18   :  { %90 = vmatpush1.bf16.msra.mxu1 %v66_v9  ;;  %v510_v18 = vpack.c.bf16 %v506_v16, %v504_v15  ;;  %v503_v21 = vld [vmem:[#allocation2 + $0x60] sm:$0xff]  ;;  %v68_v22 = vpack.c.bf16 %v64_v20, %v62_v19  ;;  %v505_v23 = vld [vmem:[#allocation2 + $0x70] sm:$0xff]  ;;  %v49_v27 = vld [vmem:[%s1419_s2 + $0x8] sm:$0xff]  ;;  %vm255_vm11 = vcmask 1031168   ;;  %vm268_vm12 = vcmask 916480  }
  0x19   :  { %512 = vmatpush1.bf16.msra.mxu0 %v507_v13  ;;  %91 = vmatprep.subr.bf16.mxu1 %v69_v17  ;;  %v509_v24 = vpack.c.bf16 %v505_v23, %v503_v21  ;;  %v915_v25 = vld [vmem:[%s1418_s1] sm:$0xff]   ;;  %v169_v13 = vsub.s32 1, %v164_v62  ;;  %vm1231_vm8 = vmneg %vm202_vm7  ;;  %vm279_vm13 = vcmask 908288   ;;  %vm290_vm14 = vcmask 900096  }
  0x1a   :  { %513 = vmatprep.subr.bf16.mxu0 %v510_v18  ;;  %v48_v26 = vld [vmem:[%s1419_s2] sm:$0xff]  ;;  %vm301_vm15 = vcmask 785408  }
  0x1b   :  { %72 = vperm.xlu0 %913, %v48_v26   ;;  %v56_v56 = vld [vmem:[%s1423_s6] sm:$0x3]  ;;  %s1087_s6 = smov 127  }
  0x1c   :  { %92 = vmatpush1.bf16.msra.mxu1 %v68_v22  ;;  %v54_v59 = vld [vmem:[%s1422_s5] sm:$0x3]  ;;  %vm57_vm1 = vcmp.ne.f32.partialorder %v56_v56, 0.0  ;;  %s1086_s5 = smov 17  }
  0x1d   :  { %514 = vmatpush1.bf16.msra.mxu0 %v509_v24  ;;  %vm55_vm2 = vcmp.ne.f32.partialorder %v54_v59, 0.0  ;;  %v179_v9 = vsel %vm57_vm1, 1, %v1085_v0  ;;  %vm323_vm1 = vcmask 769024  }
  0x1e   :  { %v162_v12 = vsel %vm55_vm2, 1, %v1085_v0  ;;  %v183_v15 = vrot.slane %v179_v9, %v165_v8  ;;  %v187_v17 = vrot.slane %v179_v9, %v169_v13 }
  0x1f   :  { %861 = vmatmul.mubr.msk.bf16.vlgmr.msra.gmra.mrb[0].mxu1 %vm85_vm0, %v915_v25  ;;  %77 = vperm.xlu0 %913, %v49_v27   ;;  %v166_v16 = vrot.slane %v162_v12, %v165_v8  ;;  %v170_v18 = vrot.slane %v162_v12, %v169_v13 }
  0x20   :  { %882 = vmatmul.mubr.msk.bf16.vlgmr.msra.gmra.mrb[0].mxu0 %vm85_vm0, %v915_v25  ;;  %vm188_vm3 = vcmp.eq.s32.totalorder %v183_v15, 1  ;;  %vm189_vm5 = vcmp.eq.s32.totalorder %v187_v17, 1  ;;  %vm312_vm0 = vcmask 777216  }
  0x21   :  { %vm171_vm4 = vcmp.eq.s32.totalorder %v166_v16, 1  ;;  %vm172_vm6 = vcmp.eq.s32.totalorder %v170_v18, 1 }
  0x9a   :  { %v73_v28 = vpop.permute.xlu0 %72 }
  0x9e   :  { %v78_v29 = vpop.permute.xlu0 %77 }
  0xf2   :  { %v123_v30 = vpop.f32.mrb[0].mxu1 }
  0xf3   :  { %v1164_v31 = vadd.f32 %v123_v30, %v73_v28  ;;  %v545_v32 = vpop.f32.mrb[0].mxu0  ;;  %v125_v33 = vpop.f32.mrb[1].mxu1 }
  0xf4   :  { %v1166_v34 = vadd.f32 %v545_v32, %v73_v28  ;;  %v1168_v35 = vadd.f32 %v125_v33, %v73_v28  ;;  %v547_v36 = vpop.f32.mrb[1].mxu0  ;;  %v127_v37 = vpop.f32.mrb[2].mxu1 }
  0xf5   :  { %v862_v38 = vmul.f32 -1.442695, %v1164_v31  ;;  %v1171_v39 = vadd.f32 %v547_v36, %v73_v28  ;;  %v1173_v40 = vadd.f32 %v127_v37, %v78_v29  ;;  %v549_v41 = vpop.f32.mrb[2].mxu0  ;;  %v129_v42 = vpop.f32.mrb[3].mxu1 }
  0xf6   :  { %v883_v43 = vmul.f32 -1.442695, %v1166_v34  ;;  %v863_v44 = vmul.f32 -1.442695, %v1168_v35  ;;  %v1177_v45 = vadd.f32 %v549_v41, %v78_v29  ;;  %v1179_v46 = vadd.f32 %v129_v42, %v78_v29  ;;  %v551_v47 = vpop.f32.mrb[3].mxu0 }
  0xf7   :  { %922 = vpow2.f32 %v862_v38  ;;  %v884_v48 = vmul.f32 -1.442695, %v1171_v39  ;;  %v864_v49 = vmul.f32 -1.442695, %v1173_v40  ;;  %v1183_v50 = vadd.f32 %v551_v47, %v78_v29 }
  0xf8   :  { %924 = vpow2.f32 %v883_v43  ;;  %v885_v51 = vmul.f32 -1.442695, %v1177_v45  ;;  %v865_v52 = vmul.f32 -1.442695, %v1179_v46 }
  0xf9   :  { %926 = vpow2.f32 %v863_v44  ;;  %v886_v53 = vmul.f32 -1.442695, %v1183_v50 }
  0xfa   :  { %928 = vpow2.f32 %v884_v48 }
  0xfb   :  { %930 = vpow2.f32 %v864_v49 }
  0xfc   :  { %932 = vpow2.f32 %v885_v51 }
  0xfd   :  { %934 = vpow2.f32 %v865_v52 }
  0xfe   :  { %936 = vpow2.f32 %v886_v53 }
 0x101   :  { %v923_v55 = vpop.eup %922 }
 0x102   :  { %v925_v57 = vpop.eup %924  ;;  %v144_v58 = vadd.f32 1.0, %v923_v55 }
 0x103   :  { %v927_v60 = vpop.eup %926  ;;  %v566_v61 = vadd.f32 1.0, %v925_v57 }
 0x104   :  { %v929_v63 = vpop.eup %928  ;;  %938 = vrcp.f32 %v144_v58  ;;  %v145_v1 = vadd.f32 1.0, %v927_v60 }
 0x105   :  { %v931_v2 = vpop.eup %930  ;;  %940 = vrcp.f32 %v566_v61  ;;  %v567_v3 = vadd.f32 1.0, %v929_v63 }
 0x106   :  { %v933_v4 = vpop.eup %932  ;;  %942 = vrcp.f32 %v145_v1  ;;  %v146_v5 = vadd.f32 1.0, %v931_v2 }
 0x107   :  { %v935_v6 = vpop.eup %934  ;;  %944 = vrcp.f32 %v567_v3  ;;  %v568_v7 = vadd.f32 1.0, %v933_v4 }
 0x108   :  { %v937_v10 = vpop.eup %936  ;;  %946 = vrcp.f32 %v146_v5  ;;  %v147_v11 = vadd.f32 1.0, %v935_v6 }
 0x109   :  { %948 = vrcp.f32 %v568_v7  ;;  %v569_v14 = vadd.f32 1.0, %v937_v10 }
 0x10a   :  { %950 = vrcp.f32 %v147_v11 }
 0x10b   :  { %952 = vrcp.f32 %v569_v14 }
 0x10e   :  { %v939_v19 = vpop.eup %938 }
 0x10f   :  { %v941_v20 = vpop.eup %940  ;;  %v156_v21 = vmul.f32 %v939_v19, %v1164_v31 }
 0x110   :  { %v943_v22 = vpop.eup %942  ;;  %v578_v23 = vmul.f32 %v941_v20, %v1166_v34 }
 0x111   :  { %v945_v0 = vpop.eup %944  ;;  %v157_v24 = vmul.f32 %v943_v22, %v1168_v35  ;;  %v190_v27 = vsel %vm188_vm3, %v156_v21, 0.0  ;;  %v173_v28 = vsel %vm171_vm4, %v156_v21, 0.0 }
 0x112   :  { %v947_v25 = vpop.eup %946  ;;  %v579_v26 = vmul.f32 %v945_v0, %v1171_v39  ;;  %v590_v31 = vsel %vm188_vm3, %v578_v23, 0.0  ;;  %v584_v33 = vsel %vm171_vm4, %v578_v23, 0.0 }
 0x113   :  { %v949_v29 = vpop.eup %948  ;;  %v158_v30 = vmul.f32 %v947_v25, %v1173_v40  ;;  %v191_v32 = vsel %vm189_vm5, %v157_v24, 0.0  ;;  %v174_v37 = vsel %vm172_vm6, %v157_v24, 0.0 }
 0x114   :  { %v951_v34 = vpop.eup %950  ;;  %v580_v35 = vmul.f32 %v949_v29, %v1177_v45  ;;  %v591_v36 = vsel %vm189_vm5, %v579_v26, 0.0  ;;  %v585_v38 = vsel %vm172_vm6, %v579_v26, 0.0  ;;  %v916_v29 = vld [vmem:[%s1420_s3 + $0x4] ss:$8 sps:$4 sm:$0xff]  }
 0x115   :  { %v953_v39 = vpop.eup %952  ;;  %v159_v41 = vmul.f32 %v951_v34, %v1179_v46  ;;  %v160_v42 = vpack.c.bf16 %v158_v30, %v156_v21  ;;  %v192_v40 = vsel %vm188_vm3, %v158_v30, 0.0  ;;  %v175_v43 = vsel %vm171_vm4, %v158_v30, 0.0  ;;  %872 = vmatprep.mubr.msk.bf16.mxu1 %vm366_vm9, %v916_v29  ;;  %889 = vmatprep.mubr.msk.bf16.mxu0 %vm366_vm9, %v916_v29  ;;  %v50_v30 = vld [vmem:[%s1421_s4] sm:$0xff] }
 0x116   :  { %v581_v44 = vmul.f32 %v953_v39, %v1183_v50  ;;  %v582_v47 = vpack.c.bf16 %v580_v35, %v578_v23  ;;  %v194_v48 = vpack.c.bf16 %v192_v40, %v190_v27  ;;  %v592_v45 = vsel %vm188_vm3, %v580_v35, 0.0 }
 0x117   :  { %214 = vrot.lane.b32.xlu1 %v160_v42, %s1086_s5  ;;  %v161_v49 = vpack.c.bf16 %v159_v41, %v157_v24  ;;  %v594_v51 = vpack.c.bf16 %v592_v45, %v590_v31  ;;  %v177_v52 = vpack.c.bf16 %v175_v43, %v173_v28  ;;  %v193_v53 = vsel %vm189_vm5, %v159_v41, 0.0  ;;  %v52_v31 = vld [vmem:[%s1421_s4 + $0x10] sm:$0xff] }
 0x118   :  { %611 = vrot.lane.b32.xlu0 %v582_v47, %s1086_s5  ;;  %v583_v46 = vpack.c.bf16 %v581_v44, %v579_v26  ;;  %v195_v54 = vpack.c.bf16 %v193_v53, %v191_v32  ;;  %v586_v55 = vsel %vm171_vm4, %v580_v35, 0.0  ;;  %v593_v56 = vsel %vm189_vm5, %v581_v44, 0.0  ;;  %v51_v32 = vld [vmem:[%s1421_s4 + $0x8] sm:$0xff] }
 0x119   :  { %v588_v57 = vpack.c.bf16 %v586_v55, %v584_v33  ;;  %v595_v50 = vpack.c.bf16 %v593_v56, %v591_v36  ;;  %v176_v58 = vsel %vm172_vm6, %v159_v41, 0.0  ;;  %v587_v59 = vsel %vm172_vm6, %v581_v44, 0.0  ;;  %v53_v33 = vld [vmem:[%s1421_s4 + $0x18] sm:$0xff] }
 0x11a   :  { %v178_v60 = vpack.c.bf16 %v176_v58, %v174_v37  ;;  %v589_v61 = vpack.c.bf16 %v587_v59, %v585_v38 }
 0x11b   :  { %216 = vrot.lane.b32.xlu1 %v161_v49, %s1086_s5 }
 0x11c   :  { %225 = vrot.lane.b32.xlu0 %v194_v48, %s1086_s5 }
 0x11f   :  { %613 = vrot.lane.b32.xlu1 %v583_v46, %s1086_s5 }
 0x120   :  { %622 = vrot.lane.b32.xlu0 %v594_v51, %s1086_s5 }
 0x123   :  { %227 = vrot.lane.b32.xlu1 %v195_v54, %s1086_s5 }
 0x124   :  { %198 = vrot.lane.b32.xlu0 %v177_v52, %s1086_s5 }
 0x127   :  { %624 = vrot.lane.b32.xlu1 %v595_v50, %s1086_s5 }
 0x128   :  { %598 = vrot.lane.b32.xlu0 %v588_v57, %s1086_s5 }
 0x12b   :  { %200 = vrot.lane.b32.xlu1 %v178_v60, %s1086_s5 }
 0x12f   :  { %600 = vrot.lane.b32.xlu1 %v589_v61, %s1086_s5 }
 0x189   :  { %v215_v62 = vpop.permute.xlu1 %214 }
 0x18a   :  { %v612_v63 = vpop.permute.xlu0 %611  ;;  %v220_v1 = vsel %vm202_vm7, 0, %v215_v62 }
 0x18b   :  { %v617_v2 = vsel %vm202_vm7, 0, %v612_v63  ;;  %236 = vrot.lane.b32.xlu0 %v220_v1, %s1087_s6 }
 0x18c   :  { %633 = vrot.lane.b32.xlu1 %v617_v2, %s1087_s6 }
 0x18d   :  { %v217_v3 = vpop.permute.xlu1 %216 }
 0x18e   :  { %v226_v4 = vpop.permute.xlu0 %225  ;;  %v218_v8 = vsel %vm202_vm7, %v215_v62, %v217_v3  ;;  %v222_v9 = vsel %vm202_vm7, %v217_v3, 0 }
 0x18f   :  { %273 = vrot.lane.b32.xlu0 %v220_v1, %s1088_s22  ;;  %v231_v16 = vsel %vm202_vm7, 0, %v226_v4 }
 0x190   :  { %667 = vrot.lane.b32.xlu1 %v617_v2, %s1088_s22 }
 0x191   :  { %v614_v5 = vpop.permute.xlu1 %613 }
 0x192   :  { %v623_v6 = vpop.permute.xlu0 %622  ;;  %v615_v12 = vsel %vm202_vm7, %v612_v63, %v614_v5  ;;  %v619_v13 = vsel %vm202_vm7, %v614_v5, 0 }
 0x193   :  { %306 = vrot.lane.b32.xlu0 %v220_v1, %s1089_s23  ;;  %v628_v18 = vsel %vm202_vm7, 0, %v623_v6 }
 0x194   :  { %697 = vrot.lane.b32.xlu1 %v617_v2, %s1089_s23 }
 0x195   :  { %v228_v7 = vpop.permute.xlu1 %227 }
 0x196   :  { %v199_v11 = vpop.permute.xlu0 %198  ;;  %v229_v0 = vsel %vm202_vm7, %v226_v4, %v228_v7  ;;  %v233_v24 = vsel %vm202_vm7, %v228_v7, 0 }
 0x197   :  { %238 = vrot.lane.b32.xlu0 %v218_v8, %s1087_s6  ;;  %v208_v21 = vsel %vm202_vm7, 0, %v199_v11 }
 0x198   :  { %240 = vrot.lane.b32.xlu1 %v222_v9, %s1087_s6 }
 0x199   :  { %v625_v10 = vpop.permute.xlu1 %624 }
 0x19a   :  { %v599_v19 = vpop.permute.xlu0 %598  ;;  %v626_v25 = vsel %vm202_vm7, %v623_v6, %v625_v10  ;;  %v630_v26 = vsel %vm202_vm7, %v625_v10, 0 }
 0x19b   :  { %635 = vrot.lane.b32.xlu0 %v615_v12, %s1087_s6  ;;  %v605_v23 = vsel %vm202_vm7, 0, %v599_v19 }
 0x19c   :  { %637 = vrot.lane.b32.xlu1 %v619_v13, %s1087_s6 }
 0x19d   :  { %v201_v14 = vpop.permute.xlu1 %200 }
 0x19e   :  { %v203_v17 = vsel %vm202_vm7, %v199_v11, %v201_v14  ;;  %v211_v27 = vsel %vm202_vm7, %v201_v14, 0 }
 0x19f   :  { %249 = vrot.lane.b32.xlu0 %v231_v16, %s1090_s24  ;;  %373 = vmatprep.subr.bf16.mxu1 %v203_v17 }
 0x1a0   :  { %645 = vrot.lane.b32.xlu1 %v628_v18, %s1090_s24  ;;  %871 = vmatpush1.bf16.msk.msra.mxu1 %vm1231_vm8, %v199_v11 }
 0x1a1   :  { %v601_v20 = vpop.permute.xlu1 %600 }
 0x1a2   :  { %v602_v22 = vsel %vm202_vm7, %v599_v19, %v601_v20  ;;  %v608_v28 = vsel %vm202_vm7, %v601_v20, 0 }
 0x1a3   :  { %262 = vrot.lane.b32.xlu0 %v208_v21, %s1091_s25  ;;  %717 = vmatprep.subr.bf16.mxu0 %v602_v22 }
 0x1a4   :  { %657 = vrot.lane.b32.xlu1 %v605_v23, %s1091_s25  ;;  %888 = vmatpush1.bf16.msk.msra.mxu0 %vm1231_vm8, %v599_v19 }
 0x1a7   :  { %275 = vrot.lane.b32.xlu0 %v218_v8, %s1088_s22 }
 0x1a8   :  { %277 = vrot.lane.b32.xlu1 %v222_v9, %s1088_s22 }
 0x1ab   :  { %669 = vrot.lane.b32.xlu0 %v615_v12, %s1088_s22 }
 0x1ac   :  { %671 = vrot.lane.b32.xlu1 %v619_v13, %s1088_s22 }
 0x1af   :  { %284 = vrot.lane.b32.xlu0 %v231_v16, %s1092_s26 }
 0x1b0   :  { %677 = vrot.lane.b32.xlu1 %v628_v18, %s1092_s26 }
 0x1b3   :  { %295 = vrot.lane.b32.xlu0 %v208_v21, %s1093_s27 }
 0x1b4   :  { %687 = vrot.lane.b32.xlu1 %v605_v23, %s1093_s27 }
 0x1b7   :  { %308 = vrot.lane.b32.xlu0 %v218_v8, %s1089_s23 }
 0x1b8   :  { %310 = vrot.lane.b32.xlu1 %v222_v9, %s1089_s23 }
 0x1bb   :  { %699 = vrot.lane.b32.xlu0 %v615_v12, %s1089_s23 }
 0x1bc   :  { %701 = vrot.lane.b32.xlu1 %v619_v13, %s1089_s23 }
 0x1bf   :  { %251 = vrot.lane.b32.xlu0 %v229_v0, %s1090_s24 }
 0x1c0   :  { %253 = vrot.lane.b32.xlu1 %v233_v24, %s1090_s24 }
 0x1c3   :  { %647 = vrot.lane.b32.xlu0 %v626_v25, %s1090_s24 }
 0x1c4   :  { %649 = vrot.lane.b32.xlu1 %v630_v26, %s1090_s24 }
 0x1c7   :  { %264 = vrot.lane.b32.xlu0 %v203_v17, %s1091_s25 }
 0x1c8   :  { %266 = vrot.lane.b32.xlu1 %v211_v27, %s1091_s25 }
 0x1cb   :  { %659 = vrot.lane.b32.xlu0 %v602_v22, %s1091_s25 }
 0x1cc   :  { %661 = vrot.lane.b32.xlu1 %v608_v28, %s1091_s25 }
 0x1cf   :  { %286 = vrot.lane.b32.xlu0 %v229_v0, %s1092_s26 }
 0x1d0   :  { %288 = vrot.lane.b32.xlu1 %v233_v24, %s1092_s26 }
 0x1d3   :  { %679 = vrot.lane.b32.xlu0 %v626_v25, %s1092_s26 }
 0x1d4   :  { %681 = vrot.lane.b32.xlu1 %v630_v26, %s1092_s26 }
 0x1d7   :  { %297 = vrot.lane.b32.xlu0 %v203_v17, %s1093_s27 }
 0x1d8   :  { %299 = vrot.lane.b32.xlu1 %v211_v27, %s1093_s27 }
 0x1db   :  { %689 = vrot.lane.b32.xlu0 %v602_v22, %s1093_s27 }
 0x1dc   :  { %691 = vrot.lane.b32.xlu1 %v608_v28, %s1093_s27 }
 0x1df   :  { %319 = vrot.lane.b32.xlu0 %v229_v0, %s1094_s30 }
 0x1e0   :  { %321 = vrot.lane.b32.xlu1 %v233_v24, %s1094_s30 }
 0x1e3   :  { %709 = vrot.lane.b32.xlu0 %v626_v25, %s1094_s30 }
 0x1e4   :  { %711 = vrot.lane.b32.xlu1 %v630_v26, %s1094_s30 }
 0x1e7   :  { %317 = vrot.lane.b32.xlu0 %v231_v16, %s1094_s30 }
 0x1e8   :  { %707 = vrot.lane.b32.xlu1 %v628_v18, %s1094_s30 }
 0x1eb   :  { %330 = vperm.xlu0 %913, %v50_v30  }
 0x1ec   :  { %335 = vperm.xlu1 %914, %v51_v32  }
 0x1ef   :  { %340 = vperm.xlu0 %913, %v52_v31  }
 0x1f0   :  { %345 = vperm.xlu1 %914, %v53_v33  }
 0x1fd   :  { %v237_v34 = vpop.permute.xlu0 %236 }
 0x1fe   :  { %v634_v35 = vpop.permute.xlu1 %633 }
 0x201   :  { %v274_v36 = vpop.permute.xlu0 %273 }
 0x202   :  { %v1288_v37 = vpop.permute.xlu1 %667 }
 0x205   :  { %v1290_v38 = vpop.permute.xlu0 %306 }
 0x206   :  { %v1292_v39 = vpop.permute.xlu1 %697 }
 0x209   :  { %v239_v41 = vpop.permute.xlu0 %238 }
 0x20a   :  { %v243_v42 = vsel %vm242_vm10, %v237_v34, %v239_v41  ;;  %v241_v40 = vpop.permute.xlu1 %240 }
 0x20b   :  { %v244_v43 = vsel %vm242_vm10, %v239_v41, %v241_v40 }
 0x20c   :  { %375 = vmatprep.subr.bf16.mxu1 %v244_v43 }
 0x20d   :  { %376 = vmatpush1.bf16.msra.mxu1 %v243_v42  ;;  %v636_v44 = vpop.permute.xlu0 %635 }
 0x20e   :  { %v639_v47 = vsel %vm242_vm10, %v634_v35, %v636_v44  ;;  %v638_v48 = vpop.permute.xlu1 %637 }
 0x20f   :  { %v640_v45 = vsel %vm242_vm10, %v636_v44, %v638_v48 }
 0x210   :  { %719 = vmatprep.subr.bf16.mxu0 %v640_v45 }
 0x211   :  { %720 = vmatpush1.bf16.msra.mxu0 %v639_v47  ;;  %v250_v49 = vpop.permute.xlu0 %249 }
 0x212   :  { %v646_v51 = vpop.permute.xlu1 %645 }
 0x215   :  { %v263_v52 = vpop.permute.xlu0 %262 }
 0x216   :  { %v658_v53 = vpop.permute.xlu1 %657 }
 0x219   :  { %v276_v46 = vpop.permute.xlu0 %275 }
 0x21a   :  { %v278_v54 = vpop.permute.xlu1 %277  ;;  %v280_v18 = vsel %vm279_vm13, %v274_v36, %v276_v46 }
 0x21b   :  { %v281_v14 = vsel %vm279_vm13, %v276_v46, %v278_v54  ;;  %v921_v46 = vld [vmem:[%s1420_s3 + $0x10] ss:$8 sps:$4 sm:$0xff]  }
 0x21d   :  { %v670_v55 = vpop.permute.xlu0 %669 }
 0x21e   :  { %v672_v56 = vpop.permute.xlu1 %671  ;;  %v673_v0 = vsel %vm279_vm13, %v1288_v37, %v670_v55 }
 0x21f   :  { %v674_v20 = vsel %vm279_vm13, %v670_v55, %v672_v56 }
 0x221   :  { %v285_v57 = vpop.permute.xlu0 %284 }
 0x222   :  { %v678_v50 = vpop.permute.xlu1 %677 }
 0x225   :  { %v296_v58 = vpop.permute.xlu0 %295 }
 0x226   :  { %v1294_v59 = vpop.permute.xlu1 %687 }
 0x229   :  { %v1296_v60 = vpop.permute.xlu0 %308 }
 0x22a   :  { %v311_v61 = vpop.permute.xlu1 %310  ;;  %v313_v37 = vsel %vm312_vm0, %v1290_v38, %v1296_v60 }
 0x22b   :  { %v314_v33 = vsel %vm312_vm0, %v1296_v60, %v311_v61 }
 0x22d   :  { %v1298_v62 = vpop.permute.xlu0 %699 }
 0x22e   :  { %v1300_v63 = vpop.permute.xlu1 %701  ;;  %v703_v44 = vsel %vm312_vm0, %v1292_v39, %v1298_v62  ;;  %v919_v39 = vld [vmem:[%s1420_s3 + $0x14] ss:$8 sps:$4 sm:$0xff]  }
 0x22f   :  { %v704_v42 = vsel %vm312_vm0, %v1298_v62, %v1300_v63 }
 0x231   :  { %v252_v1 = vpop.permute.xlu0 %251 }
 0x232   :  { %v256_v2 = vsel %vm255_vm11, %v250_v49, %v252_v1  ;;  %v254_v3 = vpop.permute.xlu1 %253 }
 0x233   :  { %v257_v4 = vsel %vm255_vm11, %v252_v1, %v254_v3 }
 0x234   :  { %377 = vmatprep.subr.bf16.mxu1 %v257_v4 }
 0x235   :  { %378 = vmatpush1.bf16.msra.mxu1 %v256_v2  ;;  %v648_v5 = vpop.permute.xlu0 %647 }
 0x236   :  { %v651_v6 = vsel %vm255_vm11, %v646_v51, %v648_v5  ;;  %v650_v7 = vpop.permute.xlu1 %649 }
 0x237   :  { %v652_v8 = vsel %vm255_vm11, %v648_v5, %v650_v7 }
 0x238   :  { %721 = vmatprep.subr.bf16.mxu0 %v652_v8 }
 0x239   :  { %722 = vmatpush1.bf16.msra.mxu0 %v651_v6  ;;  %v265_v9 = vpop.permute.xlu0 %264 }
 0x23a   :  { %v269_v10 = vsel %vm268_vm12, %v263_v52, %v265_v9  ;;  %v267_v11 = vpop.permute.xlu1 %266  ;;  %v918_v52 = vld [vmem:[%s1420_s3] ss:$8 sps:$4 sm:$0xff]   ;;  %s1095_s3 = smov [#allocation5]  }
 0x23b   :  { %v270_v12 = vsel %vm268_vm12, %v265_v9, %v267_v11  ;;  %s848_s20 = sshll.u32 %s1095_s3, 4  ;;  %s849_s20 = int_to_ptr.vmem [resolvable:$true] %s848_s20 }
 0x23c   :  { %379 = vmatprep.subr.bf16.mxu1 %v270_v12  ;;  %s1056_s21 = scalar_lea.vmem %s849_s20, 2048  ;;  %p1061_p9 = scmp.lt.s32.totalorder %s849_s20, %s849_s20 }
 0x23d   :  { %380 = vmatpush1.bf16.msra.mxu1 %v269_v10  ;;  %v660_v13 = vpop.permute.xlu0 %659  ;;  %p1057_p8 = scmp.ne.s32.totalorder %s849_s20, %s1056_s21  ;;  %p1062_p10 = scmp.lt.s32.totalorder %s1056_s21, %s1056_s21 }
 0x23e   :  { %v663_v15 = vsel %vm268_vm12, %v658_v53, %v660_v13  ;;  %381 = vmatprep.subr.bf16.mxu1 %v281_v14  ;;  %v662_v16 = vpop.permute.xlu1 %661 }
 0x23f   :  { %v664_v17 = vsel %vm268_vm12, %v660_v13, %v662_v16  ;;  %p1063_p11 = por %p1062_p10, %p1061_p9 }
 0x240   :  { %723 = vmatprep.subr.bf16.mxu0 %v664_v17 }
 0x241   :  { %382 = vmatpush1.bf16.msra.mxu1 %v280_v18  ;;  %724 = vmatpush1.bf16.msra.mxu0 %v663_v15  ;;  %v287_v19 = vpop.permute.xlu0 %286  ;;  %p1064_p12 = pnand %p1063_p11, %p1057_p8 }
 0x242   :  { %v291_v21 = vsel %vm290_vm14, %v285_v57, %v287_v19  ;;  %725 = vmatprep.subr.bf16.mxu0 %v674_v20  ;;  %v289_v22 = vpop.permute.xlu1 %288 }
 0x243   :  { %v292_v23 = vsel %vm290_vm14, %v287_v19, %v289_v22 }
 0x244   :  { %383 = vmatprep.subr.bf16.mxu1 %v292_v23 }
 0x245   :  { %384 = vmatpush1.bf16.msra.mxu1 %v291_v21  ;;  %726 = vmatpush1.bf16.msra.mxu0 %v673_v0  ;;  %v680_v24 = vpop.permute.xlu0 %679 }
 0x246   :  { %v683_v25 = vsel %vm290_vm14, %v678_v50, %v680_v24  ;;  %v682_v26 = vpop.permute.xlu1 %681 }
 0x247   :  { %v684_v27 = vsel %vm290_vm14, %v680_v24, %v682_v26 }
 0x248   :  { %727 = vmatprep.subr.bf16.mxu0 %v684_v27 }
 0x249   :  { %728 = vmatpush1.bf16.msra.mxu0 %v683_v25  ;;  %v298_v28 = vpop.permute.xlu0 %297 }
 0x24a   :  { %v302_v29 = vsel %vm301_vm15, %v296_v58, %v298_v28  ;;  %v300_v30 = vpop.permute.xlu1 %299 }
 0x24b   :  { %v303_v31 = vsel %vm301_vm15, %v298_v28, %v300_v30 }
 0x24c   :  { %385 = vmatprep.subr.bf16.mxu1 %v303_v31 }
 0x24d   :  { %386 = vmatpush1.bf16.msra.mxu1 %v302_v29  ;;  %v690_v32 = vpop.permute.xlu0 %689 }
 0x24e   :  { %v693_v34 = vsel %vm301_vm15, %v1294_v59, %v690_v32  ;;  %387 = vmatprep.subr.bf16.mxu1 %v314_v33  ;;  %v692_v35 = vpop.permute.xlu1 %691 }
 0x24f   :  { %v694_v36 = vsel %vm301_vm15, %v690_v32, %v692_v35 }
 0x250   :  { %729 = vmatprep.subr.bf16.mxu0 %v694_v36 }
 0x251   :  { %388 = vmatpush1.bf16.msra.mxu1 %v313_v37  ;;  %730 = vmatpush1.bf16.msra.mxu0 %v693_v34  ;;  %v320_v41 = vpop.permute.xlu0 %319 }
 0x252   :  { %731 = vmatprep.subr.bf16.mxu0 %v704_v42  ;;  %v322_v40 = vpop.permute.xlu1 %321 }
 0x253   :  { %v325_v43 = vsel %vm323_vm1, %v320_v41, %v322_v40 }
 0x254   :  { %389 = vmatprep.subr.bf16.mxu1 %v325_v43 }
 0x255   :  { %732 = vmatpush1.bf16.msra.mxu0 %v703_v44  ;;  %v710_v38 = vpop.permute.xlu0 %709 }
 0x256   :  { %v712_v47 = vpop.permute.xlu1 %711 }
 0x257   :  { %v714_v48 = vsel %vm323_vm1, %v710_v38, %v712_v47 }
 0x258   :  { %733 = vmatprep.subr.bf16.mxu0 %v714_v48 }
 0x259   :  { %v318_v45 = vpop.permute.xlu0 %317 }
 0x25a   :  { %v324_v49 = vsel %vm323_vm1, %v318_v45, %v320_v41  ;;  %v708_v51 = vpop.permute.xlu1 %707 }
 0x25b   :  { %v713_v53 = vsel %vm323_vm1, %v708_v51, %v710_v38  ;;  %390 = vmatpush1.bf16.msra.mxu1 %v324_v49 }
 0x25c   :  { %734 = vmatpush1.bf16.msra.mxu0 %v713_v53 }
 0x25e   :  { %406 = vmatmul.mubr.bf16.vlgmr.msra.gmra.mrb[4].mxu1 %v918_v52 }
 0x25f   :  { %750 = vmatmul.mubr.bf16.vlgmr.msra.gmra.mrb[4].mxu0 %v918_v52  ;;  %873 = vmatprep.mubr.msk.bf16.mxu1 %vm366_vm9, %v919_v39 }
 0x260   :  { %890 = vmatprep.mubr.msk.bf16.mxu0 %vm366_vm9, %v919_v39 }
 0x266   :  { %416 = vmatmul.mubr.bf16.gmra.mrb[8].mxu1 %v921_v46 }
 0x267   :  { %760 = vmatmul.mubr.bf16.gmra.mrb[8].mxu0 %v921_v46 }
 0x26a   :  { %v331_v54 = vpop.permute.xlu0 %330 }
 0x26b   :  { %v336_v56 = vpop.permute.xlu1 %335 }
 0x26e   :  { %v341_v14 = vpop.permute.xlu0 %340 }
 0x26f   :  { %v346_v17 = vpop.permute.xlu1 %345 }
 0x331   :  { %v407_v55 = vpop.f32.mrb[4].mxu1 }
 0x332   :  { %v1338_v57 = vadd.f32 %v407_v55, %v331_v54  ;;  %v751_v50 = vpop.f32.mrb[4].mxu0  ;;  %v409_v58 = vpop.f32.mrb[5].mxu1 }
 0x333   :  { %v1340_v59 = vadd.f32 %v751_v50, %v331_v54  ;;  %v1342_v60 = vadd.f32 %v409_v58, %v331_v54  ;;  %v753_v61 = vpop.f32.mrb[5].mxu0  ;;  %v411_v62 = vpop.f32.mrb[6].mxu1 }
 0x334   :  { %v874_v63 = vmul.f32 -1.442695, %v1338_v57  ;;  %v1345_v1 = vadd.f32 %v753_v61, %v331_v54  ;;  %v755_v2 = vpop.f32.mrb[6].mxu0  ;;  %v1347_v3 = vadd.f32 %v411_v62, %v336_v56  ;;  %v413_v4 = vpop.f32.mrb[7].mxu1 }
 0x335   :  { %v891_v5 = vmul.f32 -1.442695, %v1340_v59  ;;  %v875_v6 = vmul.f32 -1.442695, %v1342_v60  ;;  %v1351_v7 = vadd.f32 %v755_v2, %v336_v56  ;;  %v1353_v8 = vadd.f32 %v413_v4, %v336_v56  ;;  %v757_v9 = vpop.f32.mrb[7].mxu0 }
 0x336   :  { %954 = vpow2.f32 %v874_v63  ;;  %v892_v10 = vmul.f32 -1.442695, %v1345_v1  ;;  %v876_v11 = vmul.f32 -1.442695, %v1347_v3  ;;  %v1357_v12 = vadd.f32 %v757_v9, %v336_v56 }
 0x337   :  { %956 = vpow2.f32 %v891_v5  ;;  %v893_v13 = vmul.f32 -1.442695, %v1351_v7  ;;  %v877_v15 = vmul.f32 -1.442695, %v1353_v8 }
 0x338   :  { %958 = vpow2.f32 %v875_v6  ;;  %v894_v16 = vmul.f32 -1.442695, %v1357_v12 }
 0x339   :  { %960 = vpow2.f32 %v892_v10  ;;  %v417_v18 = vpop.f32.mrb[8].mxu1 }
 0x33a   :  { %962 = vpow2.f32 %v876_v11  ;;  %v1362_v19 = vadd.f32 %v417_v18, %v341_v14  ;;  %v761_v20 = vpop.f32.mrb[8].mxu0  ;;  %v419_v21 = vpop.f32.mrb[9].mxu1  ;;  %v1018_v18 = vld [vmem:[#allocation2] sm:$0xff] }
 0x33b   :  { %964 = vpow2.f32 %v893_v13  ;;  %v1364_v22 = vadd.f32 %v761_v20, %v341_v14  ;;  %v1366_v23 = vadd.f32 %v419_v21, %v341_v14  ;;  %v763_v0 = vpop.f32.mrb[9].mxu0  ;;  %v421_v24 = vpop.f32.mrb[10].mxu1 }
 0x33c   :  { %966 = vpow2.f32 %v877_v15  ;;  %v878_v25 = vmul.f32 -1.442695, %v1362_v19  ;;  %v1369_v26 = vadd.f32 %v763_v0, %v341_v14  ;;  %v1371_v27 = vadd.f32 %v421_v24, %v346_v17  ;;  %v765_v28 = vpop.f32.mrb[10].mxu0  ;;  %v423_v29 = vpop.f32.mrb[11].mxu1  ;;  %v1019_v24 = vld [vmem:[#allocation2 + $0x40] sm:$0xff] }
 0x33d   :  { %968 = vpow2.f32 %v894_v16  ;;  %v895_v30 = vmul.f32 -1.442695, %v1364_v22  ;;  %v879_v31 = vmul.f32 -1.442695, %v1366_v23  ;;  %v767_v32 = vpop.f32.mrb[11].mxu0  ;;  %v1377_v46 = vadd.f32 %v765_v28, %v346_v17 }
 0x33e   :  { %970 = vpow2.f32 %v878_v25  ;;  %v896_v33 = vmul.f32 -1.442695, %v1369_v26  ;;  %v880_v34 = vmul.f32 -1.442695, %v1371_v27  ;;  %v1379_v56 = vadd.f32 %v423_v29, %v346_v17  ;;  %v1020_v29 = vld [vmem:[#allocation2 + $0x8] sm:$0xff] }
 0x33f   :  { %972 = vpow2.f32 %v895_v30  ;;  %v1381_v61 = vadd.f32 %v767_v32, %v346_v17  ;;  %v897_v5 = vmul.f32 -1.442695, %v1377_v46  ;;  %v1021_v32 = vld [vmem:[#allocation2 + $0x48] sm:$0xff] }
 0x340   :  { %v955_v35 = vpop.eup %954  ;;  %974 = vpow2.f32 %v879_v31  ;;  %v881_v10 = vmul.f32 -1.442695, %v1379_v56 }
 0x341   :  { %v957_v36 = vpop.eup %956  ;;  %v450_v37 = vadd.f32 1.0, %v955_v35  ;;  %976 = vpow2.f32 %v896_v33  ;;  %v898_v14 = vmul.f32 -1.442695, %v1381_v61  ;;  %v1022_v35 = vld [vmem:[#allocation2 + $0x10] sm:$0xff] }
 0x342   :  { %v959_v41 = vpop.eup %958  ;;  %v794_v42 = vadd.f32 1.0, %v957_v36  ;;  %978 = vpow2.f32 %v880_v34 }
 0x343   :  { %v961_v40 = vpop.eup %960  ;;  %980 = vrcp.f32 %v450_v37  ;;  %v451_v43 = vadd.f32 1.0, %v959_v41  ;;  %v1023_v41 = vld [vmem:[#allocation2 + $0x50] sm:$0xff] }
 0x344   :  { %v963_v44 = vpop.eup %962  ;;  %982 = vrcp.f32 %v794_v42  ;;  %v795_v38 = vadd.f32 1.0, %v961_v40 }
 0x345   :  { %v965_v47 = vpop.eup %964  ;;  %984 = vrcp.f32 %v451_v43  ;;  %v452_v48 = vadd.f32 1.0, %v963_v44  ;;  %v1024_v43 = vld [vmem:[#allocation2 + $0x18] sm:$0xff] }
 0x346   :  { %v967_v45 = vpop.eup %966  ;;  %986 = vrcp.f32 %v795_v38  ;;  %v796_v49 = vadd.f32 1.0, %v965_v47 }
 0x347   :  { %v969_v51 = vpop.eup %968  ;;  %988 = vrcp.f32 %v452_v48  ;;  %v453_v52 = vadd.f32 1.0, %v967_v45 }
 0x348   :  { %v971_v53 = vpop.eup %970  ;;  %990 = vrcp.f32 %v796_v49  ;;  %v797_v39 = vadd.f32 1.0, %v969_v51 }
 0x349   :  { %v973_v54 = vpop.eup %972  ;;  %992 = vrcp.f32 %v453_v52  ;;  %v454_v55 = vadd.f32 1.0, %v971_v53 }
 0x34a   :  { %v975_v50 = vpop.eup %974  ;;  %994 = vrcp.f32 %v797_v39  ;;  %v798_v58 = vadd.f32 1.0, %v973_v54 }
 0x34b   :  { %v977_v62 = vpop.eup %976  ;;  %996 = vrcp.f32 %v454_v55  ;;  %v455_v63 = vadd.f32 1.0, %v975_v50 }
 0x34c   :  { %v979_v2 = vpop.eup %978  ;;  %998 = vrcp.f32 %v798_v58  ;;  %v799_v4 = vadd.f32 1.0, %v977_v62 }
 0x34d   :  { %v981_v6 = vpop.eup %980  ;;  %1000 = vrcp.f32 %v455_v63  ;;  %v456_v9 = vadd.f32 1.0, %v979_v2 }
 0x34e   :  { %v983_v11 = vpop.eup %982  ;;  %v474_v13 = vmul.f32 %v981_v6, %v1338_v57  ;;  %1002 = vrcp.f32 %v799_v4 }
 0x34f   :  { %v985_v15 = vpop.eup %984  ;;  %v818_v16 = vmul.f32 %v983_v11, %v1340_v59  ;;  %1004 = vrcp.f32 %v456_v9 }
 0x350   :  { %v987_v17 = vpop.eup %986  ;;  %v482_v20 = vadd.f32 %v1018_v18, %v474_v13  ;;  %v475_v21 = vmul.f32 %v985_v15, %v1342_v60  ;;  %1006 = vpow2.f32 %v897_v5 }
 0x351   :  { %v989_v0 = vpop.eup %988  ;;  %v826_v25 = vadd.f32 %v1019_v24, %v818_v16  ;;  %v819_v28 = vmul.f32 %v987_v17, %v1345_v1  ;;  %1008 = vpow2.f32 %v881_v10  ;;  %v1032_v17 = vld [vmem:[#allocation2 + $0x38] sm:$0xff] }
 0x352   :  { %v991_v57 = vpop.eup %990  ;;  %490 = vst [vmem:[#allocation5] sm:$0xff] %v482_v20  ;;  %v483_v30 = vadd.f32 %v1020_v29, %v475_v21  ;;  %v476_v31 = vmul.f32 %v989_v0, %v1347_v3  ;;  %1010 = vpow2.f32 %v898_v14  ;;  %v1031_v14 = vld [vmem:[#allocation2 + $0x70] sm:$0xff]  ;;  %v1033_v20 = vld [vmem:[#allocation2 + $0x78] sm:$0xff] }
 0x353   :  { %v993_v59 = vpop.eup %992  ;;  %835 = vst [vmem:[#allocation5 + $0x40] sm:$0xff] %v826_v25  ;;  %v827_v33 = vadd.f32 %v1021_v32, %v819_v28  ;;  %v820_v60 = vmul.f32 %v991_v57, %v1351_v7  ;;  %v1025_v7 = vld [vmem:[#allocation2 + $0x58] sm:$0xff] }
 0x354   :  { %v995_v34 = vpop.eup %994  ;;  %491 = vst [vmem:[#allocation5 + $0x8] sm:$0xff] %v483_v30  ;;  %v484_v36 = vadd.f32 %v1022_v35, %v476_v31  ;;  %v477_v1 = vmul.f32 %v993_v59, %v1353_v8  ;;  %v1026_v8 = vld [vmem:[#allocation2 + $0x20] sm:$0xff] }
 0x355   :  { %v997_v37 = vpop.eup %996  ;;  %836 = vst [vmem:[#allocation5 + $0x48] sm:$0xff] %v827_v33  ;;  %v828_v42 = vadd.f32 %v1023_v41, %v820_v60  ;;  %v821_v40 = vmul.f32 %v995_v34, %v1357_v12  ;;  %v1027_v12 = vld [vmem:[#allocation2 + $0x60] sm:$0xff] }
 0x356   :  { %v999_v3 = vpop.eup %998  ;;  %492 = vst [vmem:[#allocation5 + $0x10] sm:$0xff] %v484_v36  ;;  %v485_v44 = vadd.f32 %v1024_v43, %v477_v1  ;;  %v478_v38 = vmul.f32 %v997_v37, %v1362_v19  ;;  %v1028_v19 = vld [vmem:[#allocation2 + $0x28] sm:$0xff] }
 0x357   :  { %v1001_v47 = vpop.eup %1000  ;;  %837 = vst [vmem:[#allocation5 + $0x50] sm:$0xff] %v828_v42  ;;  %v829_v48 = vadd.f32 %v1025_v7, %v821_v40  ;;  %v822_v45 = vmul.f32 %v999_v3, %v1364_v22  ;;  %v1029_v22 = vld [vmem:[#allocation2 + $0x68] sm:$0xff] }
 0x358   :  { %v1003_v49 = vpop.eup %1002  ;;  %493 = vst [vmem:[#allocation5 + $0x18] sm:$0xff] %v485_v44  ;;  %v486_v51 = vadd.f32 %v1026_v8, %v478_v38  ;;  %v479_v52 = vmul.f32 %v1001_v47, %v1366_v23  ;;  %v1030_v23 = vld [vmem:[#allocation2 + $0x30] sm:$0xff] }
 0x359   :  { %v1005_v53 = vpop.eup %1004  ;;  %838 = vst [vmem:[#allocation5 + $0x58] sm:$0xff] %v829_v48  ;;  %v830_v39 = vadd.f32 %v1027_v12, %v822_v45  ;;  %v823_v54 = vmul.f32 %v1003_v49, %v1369_v26 }
 0x35a   :  { %v1007_v55 = vpop.eup %1006  ;;  %494 = vst [vmem:[#allocation5 + $0x20] sm:$0xff] %v486_v51  ;;  %v487_v50 = vadd.f32 %v1028_v19, %v479_v52  ;;  %v480_v58 = vmul.f32 %v1005_v53, %v1371_v27 }
 0x35b   :  { %v1009_v62 = vpop.eup %1008  ;;  %839 = vst [vmem:[#allocation5 + $0x60] sm:$0xff] %v830_v39  ;;  %v831_v63 = vadd.f32 %v1029_v22, %v823_v54  ;;  %v800_v2 = vadd.f32 1.0, %v1007_v55 }
 0x35c   :  { %v1011_v4 = vpop.eup %1010  ;;  %495 = vst [vmem:[#allocation5 + $0x28] sm:$0xff] %v487_v50  ;;  %v488_v5 = vadd.f32 %v1030_v23, %v480_v58  ;;  %v457_v6 = vadd.f32 1.0, %v1009_v62 }
 0x35d   :  { %840 = vst [vmem:[#allocation5 + $0x68] sm:$0xff] %v831_v63  ;;  %1012 = vrcp.f32 %v800_v2  ;;  %v801_v9 = vadd.f32 1.0, %v1011_v4 }
 0x35e   :  { %496 = vst [vmem:[#allocation5 + $0x30] sm:$0xff] %v488_v5  ;;  %1014 = vrcp.f32 %v457_v6 }
 0x35f   :  { %1016 = vrcp.f32 %v801_v9 }
 0x367   :  { %v1013_v26 = vpop.eup %1012 }
 0x368   :  { %v1015_v10 = vpop.eup %1014  ;;  %v824_v27 = vmul.f32 %v1013_v26, %v1377_v46 }
 0x369   :  { %v1017_v11 = vpop.eup %1016  ;;  %v481_v13 = vmul.f32 %v1015_v10, %v1379_v56 }
 0x36a   :  { %v832_v15 = vadd.f32 %v1031_v14, %v824_v27  ;;  %v825_v16 = vmul.f32 %v1017_v11, %v1381_v61 }
 0x36b   :  { %v489_v18 = vadd.f32 %v1032_v17, %v481_v13 }
 0x36c   :  { %841 = vst [vmem:[#allocation5 + $0x70] sm:$0xff] %v832_v15  ;;  %v833_v21 = vadd.f32 %v1033_v20, %v825_v16 }
 0x36d   :  { %497 = vst [vmem:[#allocation5 + $0x38] sm:$0xff] %v489_v18 }
 0x36e   :  { %842 = vst [vmem:[#allocation5 + $0x78] sm:$0xff] %v833_v21 }
 0x36f   :  { %1067 = shalt.err (!%p1064_p12)
}
 0x370   :  { %s1068_s22 = scalar_lea.hbm %s1424_s7, 2048 }
 0x371   :  { %p1069_p13 = scmp.ne.s32.totalorder %s1424_s7, %s1068_s22  ;;  %p1072_p0 = scmp.lt.u32.totalorder %s1068_s22, %s1424_s7 }
 0x373   :  { %p1074_p1 = pnand %p1072_p0, %p1069_p13 }
 0x375   :  { %1077 = shalt.err (!%p1074_p1)
}
 0x376   :  { %854 = dma.vmem_to_hbm [thread:$0]  %s849_s20, 2048, %s1424_s7, [#allocation4], %s1083_s11, %s1083_s11, %s1084_s12  }
 0x377   :  { %1080 = dma.done.wait [#allocation4], 2048  }
 0x378   :  { %1081 = vsyncadd [#allocation4], 4294965248 }
 0x379   :  { %858 = vsyncpa [#allocation3], 1 }
 0x37a   :  { %859 = vsyncpa [#allocation4], 1 }

</bundles_post_ra>
